<compile_context>
chip_gen: v6e
topology: v6e:2x2x1
jax: 0.10.0
libtpu: 0.0.40
codegen_flags: <defaults>
</compile_context>

<pallas_src>
import jax
import jax.numpy as jnp
from jax.experimental import pallas as pl
from jax.experimental.pallas import tpu as pltpu


# ----------------------------------------------------------------------------
# Pallas kernel: both conv branches as bf16 MXU matmuls (f32 accumulate) + ReLU,
# bf16 slice-stored output halves (both lane-dense: D_pad is a 128-multiple).
# ----------------------------------------------------------------------------
def genia_kernel(wmat_ref, emb_ref, lab_ref, catm_ref, bias_ref, out_ref):
    # wmat_ref: (n_pad, n_pad) or (TM, n_pad)  bf16  folded conv1 window weights
    # emb_ref : (n_pad, D_pad)                 bf16  full-seq token embeddings, batch b
    # lab_ref : (TM, C)                        bf16  one-hot target labels (row tile)
    # catm_ref: (C, D_pad)                     bf16  conv2_w[:, None] * category table
    # bias_ref: (2,) SMEM                      f32   [conv1_b, conv2_b]
    # out_ref : (TM, 2*D_pad)                  bf16
    D = catm_ref.shape[1]
    TM = out_ref.shape[0]

    # conv1 branch: unfold+view+conv folded into one bf16 matmul, then ReLU.
    if wmat_ref.shape[0] == TM:
        w_tile = wmat_ref[...]                       # streamed tile / single-tile case
    else:
        # Resident full wmat: slice this grid step's row tile in VMEM.
        row0 = pl.multiple_of(pl.program_id(1) * TM, TM)
        w_tile = wmat_ref[pl.ds(row0, TM), :]
    ctx = jnp.dot(w_tile, emb_ref[...], preferred_element_type=jnp.float32)
    out_ref[:, :D] = jnp.maximum(ctx + bias_ref[0], 0.0).astype(out_ref.dtype)

    # conv2 branch: one-hot labels x weighted category embeddings, then ReLU.
    cat = jnp.dot(lab_ref[...], catm_ref[...], preferred_element_type=jnp.float32)
    out_ref[:, D:] = jnp.maximum(cat + bias_ref[1], 0.0).astype(out_ref.dtype)


# ----------------------------------------------------------------------------
# Host-side helpers
# ----------------------------------------------------------------------------
def _round_up(x, m):
    return ((x + m - 1) // m) * m


def _build_conv1_matrix(n, conv1_w, window):
    """(n, n) matrix reproducing torch's unfold->view re-interleave + conv1.

    ctx[q, k, :] = padded[(q*W + k) // n + (q*W + k) % n, :]  (per batch), and
    padded row r maps to embedding row r - W//2 (zero-pad rows contribute 0).
    """
    s = window // 2
    m = jnp.arange(n)[:, None] * window + jnp.arange(window)[None, :]    # (n, W)
    emb_row = m // n + m % n - s                                         # (n, W)
    valid = (emb_row >= 0) & (emb_row < n)
    onehot = jax.nn.one_hot(jnp.where(valid, emb_row, 0), n, dtype=jnp.float32)
    onehot = onehot * valid[..., None].astype(jnp.float32)
    return jnp.einsum("qkr,k->qr", onehot, conv1_w.astype(jnp.float32))  # (n, n)


def _vmem_bytes(n_pad, D_pad, C, TM, wmat_resident):
    """Conservative VMEM estimate: 2x-buffered bf16 blocks + f32 temporaries."""
    C_l = _round_up(C, 128)                     # lane padding inside VMEM
    wmat_blk = n_pad * n_pad if wmat_resident else TM * n_pad
    bf16_blocks = wmat_blk + n_pad * D_pad + TM * C_l + C_l * D_pad + TM * 2 * D_pad
    return 2 * 2 * bf16_blocks + 2 * TM * D_pad * 4   # + f32 ctx/cat temps


def _plan_tiles(n_pad, D_pad, C, budget=40 * 1024 * 1024):
    """Pick (TM, wmat_resident, vmem_estimate) under a v7x-safe VMEM budget."""
    for wmat_resident in (True, False):
        for TM in (512, 256, 128):              # 256/512-aligned tiles feed 2x256^2 MXU
            if n_pad % TM:
                continue
            est = _vmem_bytes(n_pad, D_pad, C, TM, wmat_resident)
            if est <= budget:
                return TM, wmat_resident, est
    # TODO(synk): very long sequences should use a banded (W-sparse) conv1 instead.
    return 128, False, _vmem_bytes(n_pad, D_pad, C, 128, False)


def genia_forward(input_ids, token_type_ids, attention_mask, target_labels,
                  params, category_window_size=5):
    del token_type_ids, attention_mask  # only consumed by the (omitted) BERT encoder
    assert category_window_size % 2 == 1, "category_window_size must be odd"

    word_table = params["word_emb"]     # (V, D)
    cat_table = params["cat_emb"]       # (C, D)
    W = category_window_size

    d, n = input_ids.shape
    D = word_table.shape[1]
    C = cat_table.shape[0]

    # Pad token and feature axes to 128 multiples: lane-dense stores for both
    # output halves and clean (8,128)-aligned tiles.  No-op at production shapes.
    D_pad = _round_up(D, 128)
    n_pad = _round_up(n, 128)

    # All matmul operands travel bf16 (f32 accumulation on the MXU).
    emb = jnp.take(word_table, input_ids, axis=0).astype(jnp.bfloat16)      # (d, n, D)
    emb = jnp.pad(emb, ((0, 0), (0, n_pad - n), (0, D_pad - D)))
    labels = target_labels.reshape(d, n, C).astype(jnp.bfloat16)            # one-hot: exact in bf16
    labels = jnp.pad(labels, ((0, 0), (0, n_pad - n), (0, 0)))
    wmat = _build_conv1_matrix(n, params["conv1_w"], W)                     # (n, n) f32
    wmat = jnp.pad(wmat, ((0, n_pad - n), (0, n_pad - n))).astype(jnp.bfloat16)
    catM = params["conv2_w"][:, None] * cat_table                           # (C, D)
    catM = jnp.pad(catM, ((0, 0), (0, D_pad - D))).astype(jnp.bfloat16)
    biases = jnp.stack([params["conv1_b"], params["conv2_b"]]).astype(jnp.float32)

    TM, wmat_resident, vmem_est = _plan_tiles(n_pad, D_pad, C)
    n_tiles = n_pad // TM
    grid = (d, n_tiles)   # batch outer => emb block re-DMA only on batch change

    if wmat_resident:
        # Constant block index: wmat is DMA'd once for the whole kernel.
        wmat_spec = pl.BlockSpec((n_pad, n_pad), lambda b, t: (0, 0))
    else:
        # Fallback for very long sequences: stream row tiles of wmat.
        wmat_spec = pl.BlockSpec((TM, n_pad), lambda b, t: (t, 0))

    flops = 2 * d * n_pad * n_pad * D_pad + 2 * d * n_pad * C * D_pad
    wmat_reads = 1 if wmat_resident else d
    bytes_accessed = (emb.size * 2 + labels.size * 2 + catM.size * 2
                      + wmat.size * 2 * wmat_reads + d * n_pad * 2 * D_pad * 2)

    vmem_limit = int(min(max(vmem_est + 4 * 1024 * 1024, 16 * 1024 * 1024),
                         48 * 1024 * 1024))

    out = pl.pallas_call(
        genia_kernel,
        out_shape=jax.ShapeDtypeStruct((d, n_pad, 2 * D_pad), jnp.bfloat16),
        grid=grid,
        in_specs=[
            wmat_spec,                                                  # wmat
            pl.BlockSpec((None, n_pad, D_pad), lambda b, t: (b, 0, 0)),  # emb (full seq, per batch)
            pl.BlockSpec((None, TM, C), lambda b, t: (b, t, 0)),         # labels
            pl.BlockSpec((C, D_pad), lambda b, t: (0, 0)),               # catM (constant)
            pl.BlockSpec(memory_space=pltpu.MemorySpace.SMEM),           # biases
        ],
        out_specs=pl.BlockSpec((None, TM, 2 * D_pad), lambda b, t: (b, t, 0)),
        compiler_params=pltpu.CompilerParams(
            # Batch axis carries the v7x 2-core split; row tiles stay sequential
            # per core so the per-batch emb block is not re-DMA'd.
            dimension_semantics=("parallel", "arbitrary"),
            vmem_limit_bytes=vmem_limit,
        ),
        cost_estimate=pl.CostEstimate(
            flops=flops, transcendentals=0, bytes_accessed=bytes_accessed),
    )(wmat, emb, labels, catM, biases)

    # Strip padding (no-op copies when D and n are already 128-aligned).
    if D_pad == D and n_pad == n:
        return out                                          # (d, n, 2*D) bf16
    if D_pad == D:
        return out[:, :n, :]
    return jnp.concatenate([out[:, :n, :D], out[:, :n, D_pad:D_pad + D]], axis=-1)


# ----------------------------------------------------------------------------
# Pure-JAX reference: mirrors the torch module's math (zero-pad -> unfold ->
# .view re-interleave -> conv1 -> relu ; label-masked category embeddings ->
# conv2 -> relu ; concat), with the same bf16 input casts as the kernel.
# ----------------------------------------------------------------------------
def _reference(input_ids, target_labels, params, W):
    d, n = input_ids.shape
    D = params["word_emb"].shape[1]
    C = params["cat_emb"].shape[0]
    s = W // 2

    emb = jnp.take(params["word_emb"], input_ids, axis=0)
    emb = emb.astype(jnp.bfloat16).astype(jnp.float32)                 # (d, n, D)
    zeros = jnp.zeros((d, s, D), jnp.float32)
    padded = jnp.concatenate([zeros, emb, zeros], axis=1)              # (d, n+2s, D)
    # F.unfold(kernel=(W,1)): [b, k, i*D + j] = padded[b, i+k, j]
    unf = jnp.stack([padded[:, k:k + n, :] for k in range(W)], axis=1)  # (d, W, n, D)
    # torch .view(d*n, 1, W, D) == flat row-major reinterpretation
    ctx = unf.reshape(d, W, n * D).reshape(d * n, W, D)
    ref_ctx = jnp.maximum(
        jnp.einsum("pkj,k->pj", ctx, params["conv1_w"]) + params["conv1_b"], 0.0)

    catM = params["conv2_w"][:, None] * params["cat_emb"]
    lab = target_labels.reshape(d * n, C).astype(jnp.bfloat16).astype(jnp.float32)
    ref_cat = jnp.maximum(lab @ catM + params["conv2_b"], 0.0)

    return jnp.concatenate([ref_ctx, ref_cat], axis=-1).reshape(d, n, 2 * D)


if __name__ == "__main__":
    d, n, D, C, W, V = 2, 8, 32, 16, 5, 50   # small shapes; W must be odd

    key = jax.random.PRNGKey(0)
    k1, k2, k3, k4, k5, k6, k7, k8 = jax.random.split(key, 8)
    params = {
        "word_emb": jax.random.normal(k1, (V, D), jnp.float32) * 0.02,
        "cat_emb":  jax.random.normal(k2, (C, D), jnp.float32) * 0.02,
        "conv1_w":  jax.random.normal(k3, (W,), jnp.float32) * 0.1,
        "conv1_b":  jax.random.normal(k4, (), jnp.float32) * 0.1,
        "conv2_w":  jax.random.normal(k5, (C,), jnp.float32) * 0.1,
        "conv2_b":  jax.random.normal(k6, (), jnp.float32) * 0.1,
    }

    input_ids = jax.random.randint(k7, (d, n), 0, V)
    token_type_ids = jnp.zeros((d, n), jnp.int32)
    attention_mask = jnp.ones((d, n), jnp.int32)
    cat_idx = jax.random.randint(k8, (d, n), 0, C)
    target_labels = jax.nn.one_hot(cat_idx, C, dtype=jnp.float32)  # (d, n, C)

    wagon = genia_forward(input_ids, token_type_ids, attention_mask,
                          target_labels, params, category_window_size=W)
    wagon = jax.block_until_ready(wagon)

    ref = _reference(input_ids, target_labels, params, W)
    assert wagon.shape == (d, n, 2 * D)
    # bf16 operands / bf16 output => relaxed tolerances vs the f32 reference.
    assert jnp.allclose(wagon.astype(jnp.float32), ref, atol=1e-2, rtol=1e-2), \
        "mismatch vs reference"

    print("KERNEL_OK")
</pallas_src>

<mosaic_0001>
module attributes {stable_mosaic.version = 11 : i64} {
  func.func @genia_kernel(%arg0: i32, %arg1: i32, %arg2: memref<128x128xbf16, #tpu.memory_space<vmem>>, %arg3: memref<1x128x128xbf16, #tpu.memory_space<vmem>>, %arg4: memref<1x128x16xbf16, #tpu.memory_space<vmem>>, %arg5: memref<16x128xbf16, #tpu.memory_space<vmem>>, %arg6: memref<2xf32, #tpu.memory_space<smem>>, %arg7: memref<1x128x256xbf16, #tpu.memory_space<vmem>>) attributes {dimension_semantics = [#tpu.dimension_semantics<parallel>, #tpu.dimension_semantics<arbitrary>], iteration_bounds = array<i64: 2, 1>, scalar_prefetch = 0 : i64, scratch_operands = 0 : i64, tpu.core_type = #tpu.core_type<tc>, window_params = [{pipeline_mode = #tpu.pipeline_mode<synchronous>, transform_indices = @transform_0, window_bounds = array<i64: 128, 128>}, {transform_indices = @transform_1, window_bounds = array<i64: 1, 128, 128>}, {transform_indices = @transform_2, window_bounds = array<i64: 1, 128, 16>}, {pipeline_mode = #tpu.pipeline_mode<synchronous>, transform_indices = @transform_3, window_bounds = array<i64: 16, 128>}, {transform_indices = @transform_4, window_bounds = array<i64: 2>}, {transform_indices = @transform_5, window_bounds = array<i64: 1, 128, 256>}]} {
    %c0 = arith.constant 0 : index
    %c0_0 = arith.constant 0 : index
    %0 = vector.load %arg2[%c0, %c0_0] : memref<128x128xbf16, #tpu.memory_space<vmem>>, vector<128x128xbf16>
    %c0_1 = arith.constant 0 : index
    %c0_2 = arith.constant 0 : index
    %c0_3 = arith.constant 0 : index
    %1 = vector.load %arg3[%c0_1, %c0_2, %c0_3] : memref<1x128x128xbf16, #tpu.memory_space<vmem>>, vector<1x128x128xbf16>
    %2 = vector.shape_cast %1 : vector<1x128x128xbf16> to vector<128x128xbf16>
    %cst = arith.constant dense<0.000000e+00> : vector<128x128xf32>
    %3 = tpu.matmul %0, %2, %cst {dimension_numbers = #tpu.dot_dimension_numbers<[1], [0], [0], [1], [0, 0, 1, 1], [], []>} : vector<128x128xbf16>, vector<128x128xbf16>, vector<128x128xf32> -> vector<128x128xf32>
    %c0_4 = arith.constant 0 : index
    %4 = memref.load %arg6[%c0_4] : memref<2xf32, #tpu.memory_space<smem>>
    %5 = vector.broadcast %4 : f32 to vector<128x128xf32>
    %6 = arith.addf %3, %5 : vector<128x128xf32>
    %cst_5 = arith.constant 0.000000e+00 : f32
    %7 = vector.broadcast %cst_5 : f32 to vector<128x128xf32>
    %8 = arith.maximumf %6, %7 : vector<128x128xf32>
    %9 = arith.truncf %8 : vector<128x128xf32> to vector<128x128xbf16>
    %c0_6 = arith.constant 0 : index
    %c0_7 = arith.constant 0 : index
    %c0_8 = arith.constant 0 : index
    %10 = vector.load %arg7[%c0_6, %c0_7, %c0_8] : memref<1x128x256xbf16, #tpu.memory_space<vmem>>, vector<1x128x128xbf16>
    %11 = vector.shape_cast %10 : vector<1x128x128xbf16> to vector<128x128xbf16>
    %12 = vector.shape_cast %9 : vector<128x128xbf16> to vector<1x128x128xbf16>
    tpu.vector_store %arg7[%c0_6, %c0_7, %c0_8], %12 {strides = array<i32>} : memref<1x128x256xbf16, #tpu.memory_space<vmem>>, vector<1x128x128xbf16>,
    %c0_9 = arith.constant 0 : index
    %c0_10 = arith.constant 0 : index
    %c0_11 = arith.constant 0 : index
    %13 = vector.load %arg4[%c0_9, %c0_10, %c0_11] : memref<1x128x16xbf16, #tpu.memory_space<vmem>>, vector<1x128x16xbf16>
    %14 = vector.shape_cast %13 : vector<1x128x16xbf16> to vector<128x16xbf16>
    %c0_12 = arith.constant 0 : index
    %c0_13 = arith.constant 0 : index
    %15 = vector.load %arg5[%c0_12, %c0_13] : memref<16x128xbf16, #tpu.memory_space<vmem>>, vector<16x128xbf16>
    %cst_14 = arith.constant dense<0.000000e+00> : vector<128x128xf32>
    %16 = tpu.matmul %14, %15, %cst_14 {dimension_numbers = #tpu.dot_dimension_numbers<[1], [0], [0], [1], [0, 0, 1, 1], [], []>} : vector<128x16xbf16>, vector<16x128xbf16>, vector<128x128xf32> -> vector<128x128xf32>
    %c1 = arith.constant 1 : index
    %17 = memref.load %arg6[%c1] : memref<2xf32, #tpu.memory_space<smem>>
    %18 = vector.broadcast %17 : f32 to vector<128x128xf32>
    %19 = arith.addf %16, %18 : vector<128x128xf32>
    %cst_15 = arith.constant 0.000000e+00 : f32
    %20 = vector.broadcast %cst_15 : f32 to vector<128x128xf32>
    %21 = arith.maximumf %19, %20 : vector<128x128xf32>
    %22 = arith.truncf %21 : vector<128x128xf32> to vector<128x128xbf16>
    %c0_16 = arith.constant 0 : index
    %c0_17 = arith.constant 0 : index
    %c128 = arith.constant 128 : index
    %23 = vector.load %arg7[%c0_16, %c0_17, %c128] : memref<1x128x256xbf16, #tpu.memory_space<vmem>>, vector<1x128x128xbf16>
    %24 = vector.shape_cast %23 : vector<1x128x128xbf16> to vector<128x128xbf16>
    %25 = vector.shape_cast %22 : vector<128x128xbf16> to vector<1x128x128xbf16>
    tpu.vector_store %arg7[%c0_16, %c0_17, %c128], %25 {strides = array<i32>} : memref<1x128x256xbf16, #tpu.memory_space<vmem>>, vector<1x128x128xbf16>,
    return
  }
  func.func @transform_0(%arg0: i32, %arg1: i32) -> (i32, i32) {
    %c0_i32 = arith.constant 0 : i32
    %c0_i32_0 = arith.constant 0 : i32
    %c0_i32_1 = arith.constant 0 : i32
    return %c0_i32, %c0_i32_0 : i32, i32
  }
  func.func @transform_1(%arg0: i32, %arg1: i32) -> (i32, i32, i32) {
    %c0_i32 = arith.constant 0 : i32
    %c0_i32_0 = arith.constant 0 : i32
    %c0_i32_1 = arith.constant 0 : i32
    return %arg0, %c0_i32, %c0_i32_0 : i32, i32, i32
  }
  func.func @transform_2(%arg0: i32, %arg1: i32) -> (i32, i32, i32) {
    %c0_i32 = arith.constant 0 : i32
    %c0_i32_0 = arith.constant 0 : i32
    return %arg0, %arg1, %c0_i32 : i32, i32, i32
  }
  func.func @transform_3(%arg0: i32, %arg1: i32) -> (i32, i32) {
    %c0_i32 = arith.constant 0 : i32
    %c0_i32_0 = arith.constant 0 : i32
    %c0_i32_1 = arith.constant 0 : i32
    return %c0_i32, %c0_i32_0 : i32, i32
  }
  func.func @transform_4(%arg0: i32, %arg1: i32) -> i32 {
    %c0_i32 = arith.constant 0 : i32
    %c0_i32_0 = arith.constant 0 : i32
    return %c0_i32 : i32
  }
  func.func @transform_5(%arg0: i32, %arg1: i32) -> (i32, i32, i32) {
    %c0_i32 = arith.constant 0 : i32
    %c0_i32_0 = arith.constant 0 : i32
    return %arg0, %arg1, %c0_i32 : i32, i32, i32
  }
}

</mosaic_0001>

<bundles_post_ra>
// kernel: tpu_custom_call.1
= control target key start
LH: loop header
LB: loop body
LE: loop exit
PB: predicated region body
PF: predicated region fallthrough
CT: control target
= control target key end

     0   :  { %10 = vsyncpa [#allocation3], 0  ;;  %s1774_s0 = inlined_call_operand.hbm [shape: bf16[128,128], index: 0, kind: input, shape index: {}]   ;;  %s1775_s1 = inlined_call_operand.vmem [shape: bf16[2,128,128], index: 1, kind: input, shape index: {}]   ;;  %s1776_s2 = inlined_call_operand.vmem [shape: bf16[2,128,16], index: 2, kind: input, shape index: {}]   ;;  %s1777_s3 = inlined_call_operand.vmem [shape: bf16[16,128], index: 3, kind: input, shape index: {}]   ;;  %s1778_s4 = inlined_call_operand.vmem [shape: f32[2], index: 4, kind: input, shape index: {}]   ;;  %s1779_s5 = inlined_call_operand.hbm [shape: bf16[2,128,256], index: 5, kind: output, shape index: {}]  }
   0x1   :  { %11 = vsyncpa [#allocation5], 0 }
   0x2   :  { %12 = vsyncpa [#allocation4], 0 }
   0x3   :  { %14 = vsyncpa [#allocation4 + $0x1], 0  ;;  %s1507_s18 = smov 0   ;;  %s1509_s19 = smov 0  }
   0x4   :  { %s1511_s20 = smov 0   ;;  %s1513_s21 = smov 0  }
   0x5   :  { %s1515_s22 = smov 0   ;;  %s1517_s23 = smov 0  }
   0x6 LB: > { %s1043_s24 = sadd.s32 4294967295, %s1468_s23   ;;  %s1044_s25 = sadd.s32 4294967294, %s1468_s23   ;;  %s1468_s23 = sphi %s1517_s23, %s20_s23   ;;  %s1464_s22 = sphi %s1515_s22, %s1792_s22   ;;  %s1460_s21 = sphi %s1513_s21, %s1791_s21   ;;  %s1456_s20 = sphi %s1511_s20, %s1790_s20   ;;  %s1452_s19 = sphi %s1509_s19, %s1789_s19   ;;  %s1448_s18 = sphi %s1507_s18, %s1788_s18  }
   0x7   : > { %s32_s26 = sadd.s32 1, %s1464_s22  ;;  %s158_s27 = sadd.s32 1, %s1456_s20 }
   0x8   : > { %p34_p0 = scmp.ge.s32.totalorder %s32_s26, 2  ;;  %p168_p1 = scmp.ne.s32.totalorder %s1456_s20, %s1452_s19 }
   0x9   : > { %p169_p2 = scmp.eq.s32.totalorder %s1043_s24, 1  ;;  %p174_p3 = scmp.ne.s32.totalorder %s1452_s19, %s1448_s18 }
   0xa   : > { %s1794_s26 = smov (%p34_p0, %s32_s26), 0  ;;  %p175_p5 = scmp.eq.s32.totalorder %s1044_s25, 1 }
   0xb   : > { %p1547_p4 = por %p169_p2, %p168_p1  ;;  %s153_s29 = ssub.s32 %s1464_s22, %s1794_s26 }
   0xc   : > { %p1045_p6 = scmp.ge.s32.totalorder %s1468_s23, 1  ;;  %p156_p7 = scmp.eq.s32.totalorder %s153_s29, 0 }
   0xd   : > { %s1781_s28 = scalar_select %p1547_p4, 1, 0 }
   0xe   : > { %p1554_p8 = por %p175_p5, %p174_p3  ;;  %p182_p9 = scmp.lt.s32.totalorder %s1468_s23, 3 }
   0xf   : > { %s1560_s6 = scalar_select %p156_p7, %s1456_s20, %s158_s27  }
  0x10   : > { %s1782_s30 = scalar_select %p1554_p8, 1, 0 }
  0x11   : > { %p1562_p10 = pnand %p1045_p6, %p182_p9  ;;  %p1566_p11 = scmp.eq.s32.totalorder %s1043_s24, 0 }
  0x12   : > { %s1470_s9 = smov [#allocation2]   ;;  %s211_s14 = sshll.u32 %s1778_s4, 4  ;;  %s212_s14 = int_to_ptr.vmem [resolvable:$true] %s211_s14 }
  0x13   : > { %p1248_p12 = pneg %p1562_p10  ;;  %s194_s10 = sshll.u32 %s1470_s9, 4  ;;  %s195_s10 = int_to_ptr.vmem [resolvable:$true] %s194_s10 }
  0x14   : > { %s1354_s15 = scalar_lea.vmem %s195_s10, 1024  ;;  %p1362_p5 = scmp.lt.s32.totalorder %s195_s10, %s195_s10 }
  0x15   : > { %p1574_p13 = pnand %p1566_p11, %p1248_p12  ;;  %p1355_p1 = scmp.ne.s32.totalorder %s195_s10, %s1354_s15 }
  0x16   : > { %p1363_p6 = scmp.lt.s32.totalorder %s1354_s15, %s1354_s15 }
  0x17   : > { %p1345_p0 = pneg %p1574_p13 }
  0x18   : > { %p1364_p7 = por %p1363_p6, %p1362_p5 }
  0x19   : > { %p1357_p2 = pnand %p1355_p1, %p1345_p0 }
  0x1b   : > { %p1358_p3 = pneg %p1357_p2 }
  0x1d   : > { %p1365_p9 = pnand %p1364_p7, %p1358_p3 }
  0x1f   : > { %1368 = shalt.err (!%p1365_p9)
}
  0x20   : > { %s1471_s16 = smov 64   ;;  %s1472_s17 = smov 4  }
  0x21   : > { %1251 = dma.hbm_to_vmem [thread:$0]  (!%p1574_p13), %s1774_s0, 1024, %s195_s10, [#allocation3], %s1471_s16, %s1471_s16, %s1472_s17  }
  0x22   : > { %s1369_s27 = scalar_lea.vmem %s212_s14, 16  ;;  %p1377_p8 = scmp.lt.s32.totalorder %s212_s14, %s212_s14 }
  0x23   : > { %p1370_p12 = scmp.ne.s32.totalorder %s212_s14, %s1369_s27  ;;  %p1378_p4 = scmp.lt.s32.totalorder %s1369_s27, %s1369_s27 }
  0x25   : > { %p1372_p1 = pnand %p1370_p12, %p1345_p0  ;;  %p1379_p5 = por %p1378_p4, %p1377_p8 }
  0x27   : > { %p1373_p2 = pneg %p1372_p1 }
  0x29   : > { %p1380_p3 = pnand %p1379_p5, %p1373_p2 }
  0x2b   : > { %1383 = shalt.err (!%p1380_p3)
}
  0x2c   : > { %s1473_s29 = smov [#allocation6]   ;;  %245 = sbr.rel (%p1562_p10) target bundleno = 336 (0x150), region = 40 }
  0x2d   : > { %1254 = dma.vmem_to_smem (!%p1574_p13), %s212_s14, 16, %s1473_s29, [#allocation5]  }
  0x31   : > { %1435 = dma.done.wait (%p1566_p11), [#allocation3], 1024  }
  0x32   : > { %1437 = vsyncadd (%p1566_p11), [#allocation3], 4294966272 }
  0x33   : > { %1439 = dma.done.wait (%p1566_p11), [#allocation5], 16  }
  0x34   : > { %1441 = vsyncadd (%p1566_p11), [#allocation5], 4294967280 }
  0x35   : > { %255 = sfence }
  0x36   : > { %p287_p4 = scmp.lt.s32.totalorder %s1460_s21, 1  ;;  %v1324_v0 = vld [vmem:[%s1777_s3] sm:$0xff]   ;;  %vm693_vm0 = vcmask 130048   ;;  %v1330_v17 = vld [vmem:[#allocation2 + $0x8] sm:$0xff]   ;;  %v1333_v19 = vld [vmem:[#allocation2 + $0x10] sm:$0xff]   ;;  %s1089_s17 = sld [smem:[#allocation6 + $0x1]] }
  0x37   : > { %v1329_v1 = vld [vmem:[#allocation2] sm:$0xff]   ;;  %1220 = vmatprep.subr.bf16.mxu1 %v1324_v0  ;;  %v1334_v20 = vld [vmem:[#allocation2 + $0x18] sm:$0xff]   ;;  %v1338_v22 = vld [vmem:[#allocation2 + $0x28] sm:$0xff]   ;;  %s284_s24 = sand.u32 1, %s1452_s19   ;;  %s336_s29 = sld [smem:[#allocation6]] }
  0x38   : > { %s288_s7 = scalar_select %p287_p4, %s1460_s21, 1  ;;  %1221 = vmatpush3.bf16.msra.mxu1 %v1324_v0  ;;  %1204 = vmatprep.mubr.bf16.mxu0 %v1329_v1  ;;  %v1337_v21 = vld [vmem:[#allocation2 + $0x20] sm:$0xff]   ;;  %v1341_v23 = vld [vmem:[#allocation2 + $0x30] sm:$0xff]   ;;  %v1342_v24 = vld [vmem:[#allocation2 + $0x38] sm:$0xff]  }
  0x39   : > { %s1052_s25 = sshll.u32 %s284_s24, 7  ;;  %s1162_s9 = sshll.u32 %s1460_s21, 11 }
  0x3a   : > { %s1128_s11 = sshll.u32 %s288_s7, 6  ;;  %s1653_s27 = scalar_lea.vmem [#allocation7], %s1052_s25 }
  0x3b   : > { %s1614_s14 = scalar_lea.vmem %s1775_s1, %s1128_s11  ;;  %s1622_s16 = scalar_lea.vmem %s1776_s2, %s1128_s11 }
  0x3c   : > { %v1318_v2 = vld [vmem:[%s1614_s14 + $0x38] sm:$0xff]   ;;  %v1319_v3 = vld [vmem:[%s1614_s14 + $0x30] sm:$0xff]   ;;  %v1320_v4 = vld [vmem:[%s1614_s14 + $0x28] sm:$0xff]   ;;  %v1646_v25 = vstv %s1089_s17  ;;  %s928_s10 = sshll.u32 %s1653_s27, 4  ;;  %s1721_s12 = scalar_lea.hbm %s1779_s5, %s1162_s9  ;;  %s1723_s10 = int_to_ptr.vmem [resolvable:$true] %s928_s10 }
  0x3d   : > { %1188 = vmatprep.subr.bf16.mxu0 %v1318_v2  ;;  %v1321_v5 = vld [vmem:[%s1614_s14 + $0x20] sm:$0xff]   ;;  %v1327_v7 = vld [vmem:[%s1622_s16 + $0x8] sm:$0xff]   ;;  %v1331_v8 = vld [vmem:[%s1622_s16 + $0x10] sm:$0xff]   ;;  %s1729_s13 = scalar_lea.sflag [#allocation4], %s284_s24  ;;  %s1384_s21 = scalar_lea.vmem %s1723_s10, 2048 }
  0x3e   : > { %1189 = vmatpush3.bf16.msra.mxu0 %v1318_v2  ;;  %v1326_v6 = vld [vmem:[%s1622_s16] sm:$0xff]   ;;  %v1322_v9 = vld [vmem:[%s1614_s14 + $0x18] sm:$0xff]   ;;  %v1323_v12 = vld [vmem:[%s1614_s14 + $0x10] sm:$0xff]   ;;  %p1385_p8 = scmp.ne.s32.totalorder %s1723_s10, %s1384_s21  ;;  %p1786_p10 = scmp.ne.s32.totalorder %s1781_s28, 0 }
  0x3f   : > { %1190 = vmatprep.subr.bf16.mxu0 %v1319_v3  ;;  %1222 = vmatprep.mubr.msk.bf16.mxu1 %vm693_vm0, %v1326_v6  ;;  %v1332_v10 = vld [vmem:[%s1622_s16 + $0x18] sm:$0xff]   ;;  %v1335_v11 = vld [vmem:[%s1622_s16 + $0x20] sm:$0xff]   ;;  %v1325_v13 = vld [vmem:[%s1614_s14 + $0x8] sm:$0xff]  }
  0x40   : > { %1223 = vmatmul.mubr.msk.bf16.vlgmr.msra.gmra.mxu1 %vm693_vm0, %v1327_v7  ;;  %v1336_v14 = vld [vmem:[%s1622_s16 + $0x28] sm:$0xff]   ;;  %v1339_v15 = vld [vmem:[%s1622_s16 + $0x30] sm:$0xff]   ;;  %v1328_v16 = vld [vmem:[%s1614_s14] sm:$0xff]   ;;  %p1386_p11 = pnand %p1385_p8, %p1786_p10  ;;  %s1474_s14 = smov [#allocation7]  }
  0x41   : > { %1226 = vmatprep.mubr.msk.bf16.mxu1 %vm693_vm0, %v1331_v8  ;;  %v1340_v18 = vld [vmem:[%s1622_s16 + $0x38] sm:$0xff]   ;;  %s1388_s8 = sshll.u32 %s1474_s14, 4  ;;  %s1389_s8 = int_to_ptr.vmem [resolvable:$false] %s1388_s8 }
  0x42   : > { %1191 = vmatpush3.bf16.msra.mxu0 %v1319_v3  ;;  %v1671_v3 = vstv %s336_s29  ;;  %p1387_p13 = pneg %p1386_p11  ;;  %s1390_s15 = scalar_lea.vmem %s1389_s8, 4096 }
  0x43   : > { %1192 = vmatprep.subr.bf16.mxu0 %v1320_v4  ;;  %p1391_p0 = scmp.lt.s32.totalorder %s1723_s10, %s1389_s8  ;;  %p1392_p6 = scmp.lt.s32.totalorder %s1390_s15, %s1384_s21 }
  0x45   : > { %p1393_p7 = por %p1392_p6, %p1391_p0 }
  0x46   : > { %1193 = vmatpush3.bf16.msra.mxu0 %v1320_v4 }
  0x47   : > { %1194 = vmatprep.subr.bf16.mxu0 %v1321_v5  ;;  %p1394_p9 = pnand %p1393_p7, %p1387_p13 }
  0x48   : > { %1227 = vmatmul.mubr.msk.bf16.gmra.mxu1 %vm693_vm0, %v1332_v10 }
  0x49   : > { %1230 = vmatprep.mubr.msk.bf16.mxu1 %vm693_vm0, %v1335_v11 }
  0x4a   : > { %1195 = vmatpush3.bf16.msra.mxu0 %v1321_v5 }
  0x4b   : > { %1196 = vmatprep.subr.bf16.mxu0 %v1322_v9 }
  0x4e   : > { %1197 = vmatpush3.bf16.msra.mxu0 %v1322_v9 }
  0x4f   : > { %1198 = vmatprep.subr.bf16.mxu0 %v1323_v12 }
  0x50   : > { %1231 = vmatmul.mubr.msk.bf16.gmra.mxu1 %vm693_vm0, %v1336_v14 }
  0x51   : > { %1234 = vmatprep.mubr.msk.bf16.mxu1 %vm693_vm0, %v1339_v15 }
  0x52   : > { %1199 = vmatpush3.bf16.msra.mxu0 %v1323_v12 }
  0x53   : > { %1200 = vmatprep.subr.bf16.mxu0 %v1325_v13 }
  0x56   : > { %1201 = vmatpush3.bf16.msra.mxu0 %v1325_v13 }
  0x57   : > { %1202 = vmatprep.subr.bf16.mxu0 %v1328_v16 }
  0x58   : > { %1235 = vmatmul.mubr.msk.bf16.gmra.mxu1 %vm693_vm0, %v1340_v18 }
  0x5a   : > { %1203 = vmatpush3.bf16.msra.mxu0 %v1328_v16 }
  0x5d   : > { %1205 = vmatmul.mubr.bf16.vlgmr.msra.gmra.mxu0 %v1330_v17 }
  0x5e   : > { %1208 = vmatprep.mubr.bf16.mxu0 %v1333_v19 }
  0x65   : > { %1209 = vmatmul.mubr.bf16.gmra.mxu0 %v1334_v20 }
  0x66   : > { %1212 = vmatprep.mubr.bf16.mxu0 %v1337_v21 }
  0x6d   : > { %1213 = vmatmul.mubr.bf16.gmra.mxu0 %v1338_v22 }
  0x6e   : > { %1216 = vmatprep.mubr.bf16.mxu0 %v1341_v23 }
  0x75   : > { %1217 = vmatmul.mubr.bf16.gmra.mxu0 %v1342_v24 }
 0x100   : > { %v1224_v26 = vpop.f32.mrf.mxu1 }
 0x101   : > { %v761_v27 = vadd.f32 %v1224_v26, %v1646_v25 }
 0x102   : > { %v752_v28 = vpop.f32.mrf.mxu1 }
 0x103   : > { %v817_v29 = vmax.f32 %v761_v27, 0.0  ;;  %v753_v30 = vadd.f32 %v752_v28, %v1646_v25 }
 0x104   : > { %v1225_v31 = vpop.f32.mrf.mxu1 }
 0x105   : > { %v1148_v32 = vpack.c.bf16 %v817_v29, %v817_v29  ;;  %v815_v33 = vmax.f32 %v753_v30, 0.0  ;;  %v764_v34 = vadd.f32 %v1225_v31, %v1646_v25 }
 0x106   : > { %v755_v35 = vpop.f32.mrf.mxu1 }
 0x107   : > { %897 = vst [vmem:[%s1653_s27 + $0x14] sm:$0xf] %v1148_v32  ;;  %v1146_v36 = vpack.c.bf16 %v815_v33, %v815_v33  ;;  %v818_v37 = vmax.f32 %v764_v34, 0.0  ;;  %v756_v38 = vadd.f32 %v755_v35, %v1646_v25 }
 0x108   : > { %v1228_v39 = vpop.f32.mrf.mxu1 }
 0x109   : > { %895 = vst [vmem:[%s1653_s27 + $0x4] sm:$0xf] %v1146_v36  ;;  %v1149_v40 = vpack.c.bf16 %v818_v37, %v818_v37  ;;  %v816_v41 = vmax.f32 %v756_v38, 0.0  ;;  %v777_v42 = vadd.f32 %v1228_v39, %v1646_v25 }
 0x10a   : > { %v768_v43 = vpop.f32.mrf.mxu1 }
 0x10b   : > { %898 = vst [vmem:[%s1653_s27 + $0x1c] sm:$0xf] %v1149_v40  ;;  %v1147_v44 = vpack.c.bf16 %v816_v41, %v816_v41  ;;  %v821_v45 = vmax.f32 %v777_v42, 0.0  ;;  %v769_v46 = vadd.f32 %v768_v43, %v1646_v25 }
 0x10c   : > { %v1229_v47 = vpop.f32.mrf.mxu1 }
 0x10d   : > { %896 = vst [vmem:[%s1653_s27 + $0xc] sm:$0xf] %v1147_v44  ;;  %v1152_v48 = vpack.c.bf16 %v821_v45, %v821_v45  ;;  %v819_v49 = vmax.f32 %v769_v46, 0.0  ;;  %v780_v50 = vadd.f32 %v1229_v47, %v1646_v25 }
 0x10e   : > { %v771_v51 = vpop.f32.mrf.mxu1 }
 0x10f   : > { %901 = vst [vmem:[%s1653_s27 + $0x34] sm:$0xf] %v1152_v48  ;;  %v1150_v52 = vpack.c.bf16 %v819_v49, %v819_v49  ;;  %v822_v53 = vmax.f32 %v780_v50, 0.0  ;;  %v772_v54 = vadd.f32 %v771_v51, %v1646_v25 }
 0x110   : > { %v1232_v55 = vpop.f32.mrf.mxu1 }
 0x111   : > { %899 = vst [vmem:[%s1653_s27 + $0x24] sm:$0xf] %v1150_v52  ;;  %v1153_v56 = vpack.c.bf16 %v822_v53, %v822_v53  ;;  %v820_v57 = vmax.f32 %v772_v54, 0.0  ;;  %v793_v58 = vadd.f32 %v1232_v55, %v1646_v25 }
 0x112   : > { %v784_v59 = vpop.f32.mrf.mxu1 }
 0x113   : > { %902 = vst [vmem:[%s1653_s27 + $0x3c] sm:$0xf] %v1153_v56  ;;  %v1151_v60 = vpack.c.bf16 %v820_v57, %v820_v57  ;;  %v825_v61 = vmax.f32 %v793_v58, 0.0  ;;  %v785_v62 = vadd.f32 %v784_v59, %v1646_v25 }
 0x114   : > { %v1233_v63 = vpop.f32.mrf.mxu1 }
 0x115   : > { %900 = vst [vmem:[%s1653_s27 + $0x2c] sm:$0xf] %v1151_v60  ;;  %v1156_v0 = vpack.c.bf16 %v825_v61, %v825_v61  ;;  %v823_v1 = vmax.f32 %v785_v62, 0.0  ;;  %v796_v2 = vadd.f32 %v1233_v63, %v1646_v25 }
 0x116   : > { %v787_v4 = vpop.f32.mrf.mxu1 }
 0x117   : > { %905 = vst [vmem:[%s1653_s27 + $0x54] sm:$0xf] %v1156_v0  ;;  %v1154_v5 = vpack.c.bf16 %v823_v1, %v823_v1  ;;  %v826_v6 = vmax.f32 %v796_v2, 0.0  ;;  %v788_v7 = vadd.f32 %v787_v4, %v1646_v25 }
 0x118   : > { %v1236_v9 = vpop.f32.mrf.mxu1 }
 0x119   : > { %903 = vst [vmem:[%s1653_s27 + $0x44] sm:$0xf] %v1154_v5  ;;  %v1157_v11 = vpack.c.bf16 %v826_v6, %v826_v6  ;;  %v824_v12 = vmax.f32 %v788_v7, 0.0  ;;  %v809_v13 = vadd.f32 %v1236_v9, %v1646_v25 }
 0x11a   : > { %v800_v15 = vpop.f32.mrf.mxu1 }
 0x11b   : > { %906 = vst [vmem:[%s1653_s27 + $0x5c] sm:$0xf] %v1157_v11  ;;  %v1155_v18 = vpack.c.bf16 %v824_v12, %v824_v12  ;;  %v829_v19 = vmax.f32 %v809_v13, 0.0  ;;  %v801_v21 = vadd.f32 %v800_v15, %v1646_v25 }
 0x11c   : > { %v1237_v22 = vpop.f32.mrf.mxu1 }
 0x11d   : > { %v1206_v8 = vpop.f32.mrf.mxu0  ;;  %904 = vst [vmem:[%s1653_s27 + $0x4c] sm:$0xf] %v1155_v18  ;;  %v1160_v27 = vpack.c.bf16 %v829_v19, %v829_v19  ;;  %v827_v29 = vmax.f32 %v801_v21, 0.0  ;;  %v812_v30 = vadd.f32 %v1237_v22, %v1646_v25 }
 0x11e   : > { %v477_v10 = vadd.f32 %v1206_v8, %v1671_v3  ;;  %v803_v31 = vpop.f32.mrf.mxu1 }
 0x11f   : > { %v468_v14 = vpop.f32.mrf.mxu0  ;;  %909 = vst [vmem:[%s1653_s27 + $0x74] sm:$0xf] %v1160_v27  ;;  %v804_v35 = vadd.f32 %v803_v31, %v1646_v25  ;;  %v1158_v37 = vpack.c.bf16 %v827_v29, %v827_v29  ;;  %v830_v38 = vmax.f32 %v812_v30, 0.0 }
 0x120   : > { %v533_v16 = vmax.f32 %v477_v10, 0.0  ;;  %v469_v17 = vadd.f32 %v468_v14, %v1671_v3 }
 0x121   : > { %v1207_v20 = vpop.f32.mrf.mxu0  ;;  %v828_v42 = vmax.f32 %v804_v35, 0.0  ;;  %907 = vst [vmem:[%s1653_s27 + $0x64] sm:$0xf] %v1158_v37  ;;  %v1161_v44 = vpack.c.bf16 %v830_v38, %v830_v38 }
 0x122   : > { %v1132_v23 = vpack.c.bf16 %v533_v16, %v533_v16  ;;  %v531_v24 = vmax.f32 %v469_v17, 0.0  ;;  %v480_v26 = vadd.f32 %v1207_v20, %v1671_v3 }
 0x123   : > { %v471_v28 = vpop.f32.mrf.mxu0  ;;  %v1159_v47 = vpack.c.bf16 %v828_v42, %v828_v42  ;;  %910 = vst [vmem:[%s1653_s27 + $0x7c] sm:$0xf] %v1161_v44 }
 0x124   : > { %613 = vst [vmem:[%s1653_s27 + $0x10] sm:$0xf] %v1132_v23  ;;  %v1130_v32 = vpack.c.bf16 %v531_v24, %v531_v24  ;;  %v534_v33 = vmax.f32 %v480_v26, 0.0  ;;  %v472_v34 = vadd.f32 %v471_v28, %v1671_v3 }
 0x125   : > { %v1210_v36 = vpop.f32.mrf.mxu0  ;;  %908 = vst [vmem:[%s1653_s27 + $0x6c] sm:$0xf] %v1159_v47 }
 0x126   : > { %611 = vst [vmem:[%s1653_s27] sm:$0xf] %v1130_v32  ;;  %v1133_v39 = vpack.c.bf16 %v534_v33, %v534_v33  ;;  %v532_v40 = vmax.f32 %v472_v34, 0.0  ;;  %v493_v41 = vadd.f32 %v1210_v36, %v1671_v3 }
 0x127   : > { %v484_v43 = vpop.f32.mrf.mxu0 }
 0x128   : > { %614 = vst [vmem:[%s1653_s27 + $0x18] sm:$0xf] %v1133_v39  ;;  %v1131_v45 = vpack.c.bf16 %v532_v40, %v532_v40  ;;  %v537_v46 = vmax.f32 %v493_v41, 0.0  ;;  %v485_v25 = vadd.f32 %v484_v43, %v1671_v3 }
 0x129   : > { %v1211_v48 = vpop.f32.mrf.mxu0 }
 0x12a   : > { %612 = vst [vmem:[%s1653_s27 + $0x8] sm:$0xf] %v1131_v45  ;;  %v1136_v49 = vpack.c.bf16 %v537_v46, %v537_v46  ;;  %v535_v50 = vmax.f32 %v485_v25, 0.0  ;;  %v496_v51 = vadd.f32 %v1211_v48, %v1671_v3 }
 0x12b   : > { %v487_v52 = vpop.f32.mrf.mxu0 }
 0x12c   : > { %617 = vst [vmem:[%s1653_s27 + $0x30] sm:$0xf] %v1136_v49  ;;  %v1134_v53 = vpack.c.bf16 %v535_v50, %v535_v50  ;;  %v538_v54 = vmax.f32 %v496_v51, 0.0  ;;  %v488_v55 = vadd.f32 %v487_v52, %v1671_v3 }
 0x12d   : > { %v1214_v56 = vpop.f32.mrf.mxu0 }
 0x12e   : > { %615 = vst [vmem:[%s1653_s27 + $0x20] sm:$0xf] %v1134_v53  ;;  %v1137_v57 = vpack.c.bf16 %v538_v54, %v538_v54  ;;  %v536_v58 = vmax.f32 %v488_v55, 0.0  ;;  %v509_v59 = vadd.f32 %v1214_v56, %v1671_v3 }
 0x12f   : > { %v500_v60 = vpop.f32.mrf.mxu0 }
 0x130   : > { %618 = vst [vmem:[%s1653_s27 + $0x38] sm:$0xf] %v1137_v57  ;;  %v1135_v61 = vpack.c.bf16 %v536_v58, %v536_v58  ;;  %v541_v62 = vmax.f32 %v509_v59, 0.0  ;;  %v501_v63 = vadd.f32 %v500_v60, %v1671_v3 }
 0x131   : > { %v1215_v0 = vpop.f32.mrf.mxu0 }
 0x132   : > { %616 = vst [vmem:[%s1653_s27 + $0x28] sm:$0xf] %v1135_v61  ;;  %v1140_v1 = vpack.c.bf16 %v541_v62, %v541_v62  ;;  %v539_v2 = vmax.f32 %v501_v63, 0.0  ;;  %v512_v4 = vadd.f32 %v1215_v0, %v1671_v3 }
 0x133   : > { %v503_v5 = vpop.f32.mrf.mxu0 }
 0x134   : > { %621 = vst [vmem:[%s1653_s27 + $0x50] sm:$0xf] %v1140_v1  ;;  %v1138_v6 = vpack.c.bf16 %v539_v2, %v539_v2  ;;  %v542_v7 = vmax.f32 %v512_v4, 0.0  ;;  %v504_v8 = vadd.f32 %v503_v5, %v1671_v3 }
 0x135   : > { %v1218_v9 = vpop.f32.mrf.mxu0 }
 0x136   : > { %619 = vst [vmem:[%s1653_s27 + $0x40] sm:$0xf] %v1138_v6  ;;  %v1141_v10 = vpack.c.bf16 %v542_v7, %v542_v7  ;;  %v540_v11 = vmax.f32 %v504_v8, 0.0  ;;  %v525_v12 = vadd.f32 %v1218_v9, %v1671_v3 }
 0x137   : > { %v516_v13 = vpop.f32.mrf.mxu0 }
 0x138   : > { %622 = vst [vmem:[%s1653_s27 + $0x58] sm:$0xf] %v1141_v10  ;;  %v1139_v14 = vpack.c.bf16 %v540_v11, %v540_v11  ;;  %v545_v15 = vmax.f32 %v525_v12, 0.0  ;;  %v517_v16 = vadd.f32 %v516_v13, %v1671_v3 }
 0x139   : > { %v1219_v17 = vpop.f32.mrf.mxu0 }
 0x13a   : > { %620 = vst [vmem:[%s1653_s27 + $0x48] sm:$0xf] %v1139_v14  ;;  %v1144_v18 = vpack.c.bf16 %v545_v15, %v545_v15  ;;  %v543_v19 = vmax.f32 %v517_v16, 0.0  ;;  %v528_v20 = vadd.f32 %v1219_v17, %v1671_v3 }
 0x13b   : > { %v519_v21 = vpop.f32.mrf.mxu0 }
 0x13c   : > { %625 = vst [vmem:[%s1653_s27 + $0x70] sm:$0xf] %v1144_v18  ;;  %v1142_v22 = vpack.c.bf16 %v543_v19, %v543_v19  ;;  %v546_v23 = vmax.f32 %v528_v20, 0.0  ;;  %v520_v24 = vadd.f32 %v519_v21, %v1671_v3 }
 0x13e   : > { %623 = vst [vmem:[%s1653_s27 + $0x60] sm:$0xf] %v1142_v22  ;;  %v1145_v26 = vpack.c.bf16 %v546_v23, %v546_v23  ;;  %v544_v27 = vmax.f32 %v520_v24, 0.0 }
 0x140   : > { %626 = vst [vmem:[%s1653_s27 + $0x78] sm:$0xf] %v1145_v26  ;;  %v1143_v28 = vpack.c.bf16 %v544_v27, %v544_v27 }
 0x142   : > { %624 = vst [vmem:[%s1653_s27 + $0x68] sm:$0xf] %v1143_v28 }
 0x143   : > { %1397 = shalt.err (!%p1394_p9)
}
 0x144   : > { %s1398_s16 = scalar_lea.hbm %s1721_s12, 2048  ;;  %s1402_s25 = scalar_lea.hbm %s1779_s5, 4096 }
 0x145   : > { %p1399_p12 = scmp.ne.s32.totalorder %s1721_s12, %s1398_s16  ;;  %p1403_p5 = scmp.lt.s32.totalorder %s1721_s12, %s1779_s5 }
 0x146   : > { %p1404_p3 = scmp.lt.s32.totalorder %s1402_s25, %s1398_s16 }
 0x147   : > { %p1400_p1 = pnand %p1399_p12, %p1786_p10 }
 0x148   : > { %p1405_p4 = por %p1404_p3, %p1403_p5 }
 0x149   : > { %p1401_p2 = pneg %p1400_p1 }
 0x14b   : > { %p1406_p8 = pnand %p1405_p4, %p1401_p2 }
 0x14d   : > { %1409 = shalt.err (!%p1406_p8)
}
 0x14e   : > { %s1475_s9 = smov 128   ;;  %s1476_s7 = smov 8  }
 0x14f   : > { %1246 = dma.vmem_to_hbm [thread:$0]  (%p1786_p10), %s1723_s10, 2048, %s1721_s12, %s1729_s13, %s1475_s9, %s1475_s9, %s1476_s7  }
 0x150 PF: > { %p1263_p11 = scmp.ge.s32.totalorder %s1468_s23, 2  ;;  %s943_s11 = sand.u32 1, %s1448_s18  }
 0x151   : > { %p1787_p13 = scmp.ne.s32.totalorder %s1782_s30, 0  ;;  %s944_s21 = scalar_lea.sflag [#allocation4], %s943_s11 }
 0x153   : > { %p1256_p0 = pnand %p1263_p11, %p1787_p13 }
 0x155   : > { %p1257_p6 = pneg %p1256_p0 }
 0x157   : > { %1443 = dma.done.wait (%p1257_p6), %s944_s21, 2048  }
 0x158   : > { %1445 = vsyncadd (%p1257_p6), %s944_s21, 4294965248  ;;  %s20_s23 = sadd.s32 1, %s1468_s23   ;;  %s1788_s18 = smov %s1452_s19 }
 0x159   : > { %p17_p7 = scmp.ge.s32.totalorder %s20_s23, 4   ;;  %s1789_s19 = smov %s1456_s20 }
 0x15a   : > { %s1790_s20 = smov %s1560_s6  ;;  %s1791_s21 = smov %s1464_s22 }
 0x15b   : > { %s1792_s22 = smov %s1794_s26  ;;  %19 = sbr.rel (!%p17_p7) target bundleno = 6 (0x6), region = 88 }
 0x160   :  { %949 = vsyncpa [#allocation3], 1 }
 0x161   :  { %951 = vsyncpa [#allocation3 + $0x1], 1 }
 0x162   :  { %952 = vsyncpa [#allocation4], 1 }
 0x163   :  { %954 = vsyncpa [#allocation4 + $0x1], 1 }
 0x164   :  { %955 = vsyncpa [#allocation5], 1 }
 0x165   :  { %957 = vsyncpa [#allocation5 + $0x1], 1 }

</bundles_post_ra>
